<compile_context>
chip_gen: v6e
topology: v6e:2x2x1
jax: 0.10.0
libtpu: 0.0.40
codegen_flags: <defaults>
</compile_context>

<pallas_src>
import math

import jax
import jax.numpy as jnp
from jax import lax
from jax.experimental import pallas as pl
from jax.experimental.pallas import tpu as pltpu


def _round_up(x, m):
    return ((x + m - 1) // m) * m


_INV_SQRT2 = 1.0 / math.sqrt(2.0)
_SQRT_2_OVER_PI = math.sqrt(2.0 / math.pi)


def _gelu(x, fast):
    if fast:
        # tanh-approx GELU: the transcendental goes to the EUP slot, keeping
        # the VALU free (exact erf is a long VALU polynomial and becomes the
        # saturating slot once the matmuls run at bf16 MXU rate).
        inner = _SQRT_2_OVER_PI * (x + 0.044715 * (x * x * x))
        return 0.5 * x * (1.0 + jnp.tanh(inner))
    # PyTorch nn.GELU() default (approximate='none'): x * 0.5 * (1 + erf(x/sqrt(2)))
    return x * 0.5 * (1.0 + lax.erf(x * _INV_SQRT2))


def _make_kernel(fast):
    def kernel(x_ref, w1_ref, b1_ref, w2_ref, b2_ref, w34_ref, b34_ref, o_ref):
        # Linear(d, 2d) + GELU   (bf16 MXU dot in fast mode, f32 accumulation)
        h1 = jnp.dot(x_ref[...], w1_ref[...],
                     preferred_element_type=jnp.float32) + b1_ref[...]
        h1 = _gelu(h1, fast)
        if fast:
            h1 = h1.astype(jnp.bfloat16)
        # Linear(2d, d) + GELU
        h2 = jnp.dot(h1, w2_ref[...],
                     preferred_element_type=jnp.float32) + b2_ref[...]
        h2 = _gelu(h2, fast)
        # Fused Linear(d, d/2) -> Linear(d/2, 1): width-1 projection on VPU+XLU.
        y = jnp.sum(h2 * w34_ref[...], axis=-1, keepdims=True) + b34_ref[0, 0]
        o_ref[...] = y.astype(o_ref.dtype)
    return kernel


def permeability_regressor(x, params, *, tile_m=4096, fast=True):
    """x: (B, S, d_model). Returns (B, S) — matches .squeeze(-1).

    fast=True  : bf16 MXU dots + tanh-approx GELU (recommended).
    fast=False : exact f32 / erf path (matches PyTorch numerics tightly).
    """
    B, S, d_model = x.shape
    M = B * S
    out_dtype = x.dtype

    (w1, b1), (w2, b2), (w3, b3), (w4, b4) = params

    # Algebraic fusion of layers 3+4 (no activation in between), kept in f32:
    #   (h @ w3 + b3) @ w4 + b4  ==  h @ (w3 @ w4) + (b3 @ w4 + b4)
    w34 = (w3.astype(jnp.float32) @ w4.astype(jnp.float32)).reshape(1, d_model)
    b34 = (b1.dtype.type(0) + (b3.astype(jnp.float32) @ w4.astype(jnp.float32)
                               + b4.astype(jnp.float32))).reshape(1, 1).astype(jnp.float32)

    x2d = x.reshape(M, d_model)
    b1f = b1.astype(jnp.float32)
    b2f = b2.astype(jnp.float32)
    if fast:
        # bf16 inputs/weights for the two big dots; halves x HBM traffic too.
        x2d = x2d.astype(jnp.bfloat16)
        w1 = w1.astype(jnp.bfloat16)
        w2 = w2.astype(jnp.bfloat16)
    x_bytes = 2 if fast else 4

    # ---- VMEM budget / tile derivation (v7x has only 64 MiB per TC) -------
    try:
        info = pltpu.get_tpu_info()
        vmem_cap = int(getattr(info, "vmem_capacity_bytes", 64 * 1024 * 1024))
    except Exception:  # conservative fallback works on every generation
        vmem_cap = 64 * 1024 * 1024

    weight_bytes = (w1.size * x_bytes + w2.size * x_bytes
                    + 4 * (b1f.size + b2f.size + w34.size + b34.size))
    # Per-row live bytes: double-buffered x tile, h1 (f32 + cast copy), h2,
    # GELU temporaries / relayout slack, output.
    per_row = (2 * x_bytes * d_model      # x, double-buffered
               + 4 * 2 * d_model          # h1 in f32
               + x_bytes * 2 * d_model    # h1 cast for the second dot
               + 4 * d_model              # h2 in f32
               + 8 * d_model              # temporaries slack
               + 8)                       # output (double-buffered)
    budget = max(4 * 1024 * 1024, int(0.55 * vmem_cap) - 2 * weight_bytes)
    tm_cap = max(8, (budget // per_row) // 8 * 8)

    tm = max(8, min(_round_up(tile_m, 8), _round_up(M, 8), tm_cap))
    # Keep >=2 grid steps whenever M allows, so "parallel" can shard the grid
    # over v7x's two TensorCores (no effect on single-TC v5e/v6e).
    if M > 8:
        tm = min(tm, _round_up(pl.cdiv(M, 2), 8))

    m_pad = _round_up(M, tm)
    if m_pad != M:
        x2d = jnp.pad(x2d, ((0, m_pad - M), (0, 0)))
    grid = (m_pad // tm,)

    est = 2 * weight_bytes + tm * per_row
    vmem_limit = int(min(int(0.85 * vmem_cap), max(32 * 1024 * 1024, 2 * est)))

    resident = lambda a: pl.BlockSpec(a.shape, lambda i: (0,) * a.ndim)

    out = pl.pallas_call(
        _make_kernel(fast),
        out_shape=jax.ShapeDtypeStruct((m_pad, 1), out_dtype),
        grid_spec=pltpu.PrefetchScalarGridSpec(
            num_scalar_prefetch=0,
            grid=grid,
            in_specs=[pl.BlockSpec((tm, d_model), lambda i: (i, 0)),
                      resident(w1), resident(b1f),
                      resident(w2), resident(b2f),
                      resident(w34),
                      pl.BlockSpec(memory_space=pltpu.MemorySpace.SMEM)],
            out_specs=pl.BlockSpec((tm, 1), lambda i: (i, 0)),
        ),
        compiler_params=pltpu.CompilerParams(
            dimension_semantics=("parallel",),
            vmem_limit_bytes=vmem_limit,
        ),
    )(x2d, w1, b1f, w2, b2f, w34, b34)

    return out[:M, 0].reshape(B, S)


def init_params(key, d_model, dtype=jnp.float32):
    """nn.Linear-style init (uniform +-1/sqrt(fan_in)).

    Weights stored transposed: (in_features, out_features); biases as (1, out).
    """
    dims = [(d_model, d_model * 2),
            (d_model * 2, d_model),
            (d_model, d_model // 2),
            (d_model // 2, 1)]
    params = []
    for (fan_in, fan_out) in dims:
        key, kw, kb = jax.random.split(key, 3)
        bound = 1.0 / math.sqrt(fan_in)
        w = jax.random.uniform(kw, (fan_in, fan_out), dtype, -bound, bound)
        b = jax.random.uniform(kb, (1, fan_out), dtype, -bound, bound)
        params.append((w, b))
    return params


def _reference(x, params):
    # Unfused f32 / exact-erf reference (mirrors the PyTorch Sequential).
    (w1, b1), (w2, b2), (w3, b3), (w4, b4) = params
    h = _gelu(x @ w1 + b1[0], fast=False)
    h = _gelu(h @ w2 + b2[0], fast=False)
    h = h @ w3 + b3[0]
    h = h @ w4 + b4[0]
    return jnp.squeeze(h, axis=-1)


if __name__ == "__main__":
    key = jax.random.PRNGKey(0)
    k_x, k_p, k_x2, k_p2 = jax.random.split(key, 4)

    # Small case matching the module spec.
    B, S, d_model = 2, 8, 32
    x = jax.random.normal(k_x, (B, S, d_model), jnp.float32)
    params = init_params(k_p, d_model)
    y_ref = _reference(x, params)

    # Exact path: tight tolerance against the erf/f32 reference.
    y_exact = jax.block_until_ready(permeability_regressor(x, params, fast=False))
    assert y_exact.shape == (B, S), y_exact.shape
    assert jnp.allclose(y_exact, y_ref, atol=5e-5, rtol=5e-5), \
        float(jnp.max(jnp.abs(y_exact - y_ref)))

    # Fast path (bf16 dots + tanh GELU): looser tolerance.
    y_fast = jax.block_until_ready(permeability_regressor(x, params, fast=True))
    assert y_fast.shape == (B, S), y_fast.shape
    assert jnp.allclose(y_fast, y_ref, atol=2.5e-2, rtol=2.5e-2), \
        float(jnp.max(jnp.abs(y_fast - y_ref)))

    # Larger case exercising the multi-tile grid + row padding path.
    B2, S2, d2 = 4, 300, 128
    x2 = jax.random.normal(k_x2, (B2, S2, d2), jnp.float32)
    params2 = init_params(k_p2, d2)
    y2_ref = _reference(x2, params2)

    y2_exact = jax.block_until_ready(
        permeability_regressor(x2, params2, fast=False))
    assert y2_exact.shape == (B2, S2), y2_exact.shape
    assert jnp.allclose(y2_exact, y2_ref, atol=5e-5, rtol=5e-5), \
        float(jnp.max(jnp.abs(y2_exact - y2_ref)))

    y2_fast = jax.block_until_ready(
        permeability_regressor(x2, params2, fast=True))
    assert y2_fast.shape == (B2, S2), y2_fast.shape
    assert jnp.allclose(y2_fast, y2_ref, atol=2.5e-2, rtol=2.5e-2), \
        float(jnp.max(jnp.abs(y2_fast - y2_ref)))

    print("KERNEL_OK")
</pallas_src>

<mosaic_0001>
module attributes {stable_mosaic.version = 11 : i64} {
  func.func @kernel(%arg0: i32, %arg1: memref<8x32xf32, #tpu.memory_space<vmem>>, %arg2: memref<32x64xf32, #tpu.memory_space<vmem>>, %arg3: memref<1x64xf32, #tpu.memory_space<vmem>>, %arg4: memref<64x32xf32, #tpu.memory_space<vmem>>, %arg5: memref<1x32xf32, #tpu.memory_space<vmem>>, %arg6: memref<1x32xf32, #tpu.memory_space<vmem>>, %arg7: memref<1x1xf32, #tpu.memory_space<smem>>, %arg8: memref<8x1xf32, #tpu.memory_space<vmem>>) attributes {dimension_semantics = [#tpu.dimension_semantics<parallel>], iteration_bounds = array<i64: 2>, scalar_prefetch = 0 : i64, scratch_operands = 0 : i64, tpu.core_type = #tpu.core_type<tc>, window_params = [{transform_indices = @transform_0, window_bounds = array<i64: 8, 32>}, {pipeline_mode = #tpu.pipeline_mode<synchronous>, transform_indices = @transform_1, window_bounds = array<i64: 32, 64>}, {pipeline_mode = #tpu.pipeline_mode<synchronous>, transform_indices = @transform_2, window_bounds = array<i64: 1, 64>}, {pipeline_mode = #tpu.pipeline_mode<synchronous>, transform_indices = @transform_3, window_bounds = array<i64: 64, 32>}, {pipeline_mode = #tpu.pipeline_mode<synchronous>, transform_indices = @transform_4, window_bounds = array<i64: 1, 32>}, {pipeline_mode = #tpu.pipeline_mode<synchronous>, transform_indices = @transform_5, window_bounds = array<i64: 1, 32>}, {transform_indices = @transform_6, window_bounds = array<i64: 1, 1>}, {transform_indices = @transform_7, window_bounds = array<i64: 8, 1>}]} {
    %c0 = arith.constant 0 : index
    %c0_0 = arith.constant 0 : index
    %0 = vector.load %arg1[%c0, %c0_0] : memref<8x32xf32, #tpu.memory_space<vmem>>, vector<8x32xf32>
    %c0_1 = arith.constant 0 : index
    %c0_2 = arith.constant 0 : index
    %1 = vector.load %arg2[%c0_1, %c0_2] : memref<32x64xf32, #tpu.memory_space<vmem>>, vector<32x64xf32>
    %cst = arith.constant dense<0.000000e+00> : vector<8x64xf32>
    %2 = tpu.matmul %0, %1, %cst {dimension_numbers = #tpu.dot_dimension_numbers<[1], [0], [0], [1], [0, 0, 1, 1], [], []>} : vector<8x32xf32>, vector<32x64xf32>, vector<8x64xf32> -> vector<8x64xf32>
    %c0_3 = arith.constant 0 : index
    %c0_4 = arith.constant 0 : index
    %3 = vector.load %arg3[%c0_3, %c0_4] : memref<1x64xf32, #tpu.memory_space<vmem>>, vector<1x64xf32>
    %4 = vector.broadcast %3 : vector<1x64xf32> to vector<8x64xf32>
    %5 = arith.addf %2, %4 : vector<8x64xf32>
    %cst_5 = arith.constant 5.000000e-01 : f32
    %6 = vector.broadcast %cst_5 : f32 to vector<8x64xf32>
    %7 = arith.mulf %5, %6 : vector<8x64xf32>
    %cst_6 = arith.constant 0.707106769 : f32
    %8 = vector.broadcast %cst_6 : f32 to vector<8x64xf32>
    %9 = arith.mulf %5, %8 : vector<8x64xf32>
    %10 = math.erf %9 : vector<8x64xf32>
    %cst_7 = arith.constant 1.000000e+00 : f32
    %11 = vector.broadcast %cst_7 : f32 to vector<8x64xf32>
    %12 = arith.addf %11, %10 : vector<8x64xf32>
    %13 = arith.mulf %7, %12 : vector<8x64xf32>
    %c0_8 = arith.constant 0 : index
    %c0_9 = arith.constant 0 : index
    %14 = vector.load %arg4[%c0_8, %c0_9] : memref<64x32xf32, #tpu.memory_space<vmem>>, vector<64x32xf32>
    %cst_10 = arith.constant dense<0.000000e+00> : vector<8x32xf32>
    %15 = tpu.matmul %13, %14, %cst_10 {dimension_numbers = #tpu.dot_dimension_numbers<[1], [0], [0], [1], [0, 0, 1, 1], [], []>} : vector<8x64xf32>, vector<64x32xf32>, vector<8x32xf32> -> vector<8x32xf32>
    %c0_11 = arith.constant 0 : index
    %c0_12 = arith.constant 0 : index
    %16 = vector.load %arg5[%c0_11, %c0_12] : memref<1x32xf32, #tpu.memory_space<vmem>>, vector<1x32xf32>
    %17 = vector.broadcast %16 : vector<1x32xf32> to vector<8x32xf32>
    %18 = arith.addf %15, %17 : vector<8x32xf32>
    %cst_13 = arith.constant 5.000000e-01 : f32
    %19 = vector.broadcast %cst_13 : f32 to vector<8x32xf32>
    %20 = arith.mulf %18, %19 : vector<8x32xf32>
    %cst_14 = arith.constant 0.707106769 : f32
    %21 = vector.broadcast %cst_14 : f32 to vector<8x32xf32>
    %22 = arith.mulf %18, %21 : vector<8x32xf32>
    %23 = math.erf %22 : vector<8x32xf32>
    %cst_15 = arith.constant 1.000000e+00 : f32
    %24 = vector.broadcast %cst_15 : f32 to vector<8x32xf32>
    %25 = arith.addf %24, %23 : vector<8x32xf32>
    %26 = arith.mulf %20, %25 : vector<8x32xf32>
    %c0_16 = arith.constant 0 : index
    %c0_17 = arith.constant 0 : index
    %27 = vector.load %arg6[%c0_16, %c0_17] : memref<1x32xf32, #tpu.memory_space<vmem>>, vector<1x32xf32>
    %28 = vector.broadcast %27 : vector<1x32xf32> to vector<8x32xf32>
    %29 = arith.mulf %26, %28 : vector<8x32xf32>
    %cst_18 = arith.constant dense<0.000000e+00> : vector<8xf32>
    %30 = vector.multi_reduction <add>, %29, %cst_18 [1] : vector<8x32xf32> to vector<8xf32>
    %31 = vector.shape_cast %30 : vector<8xf32> to vector<8x1xf32>
    %c0_19 = arith.constant 0 : index
    %c0_20 = arith.constant 0 : index
    %32 = memref.load %arg7[%c0_19, %c0_20] : memref<1x1xf32, #tpu.memory_space<smem>>
    %33 = vector.broadcast %32 : f32 to vector<8x1xf32>
    %34 = arith.addf %31, %33 : vector<8x1xf32>
    %c0_21 = arith.constant 0 : index
    %c0_22 = arith.constant 0 : index
    %35 = vector.load %arg8[%c0_21, %c0_22] : memref<8x1xf32, #tpu.memory_space<vmem>>, vector<8x1xf32>
    tpu.vector_store %arg8[%c0_21, %c0_22], %34 {strides = array<i32>} : memref<8x1xf32, #tpu.memory_space<vmem>>, vector<8x1xf32>,
    return
  }
  func.func @transform_0(%arg0: i32) -> (i32, i32) {
    %c0_i32 = arith.constant 0 : i32
    %c0_i32_0 = arith.constant 0 : i32
    return %arg0, %c0_i32 : i32, i32
  }
  func.func @transform_1(%arg0: i32) -> (i32, i32) {
    %c0_i32 = arith.constant 0 : i32
    %c0_i32_0 = arith.constant 0 : i32
    %c0_i32_1 = arith.constant 0 : i32
    return %c0_i32, %c0_i32_0 : i32, i32
  }
  func.func @transform_2(%arg0: i32) -> (i32, i32) {
    %c0_i32 = arith.constant 0 : i32
    %c0_i32_0 = arith.constant 0 : i32
    %c0_i32_1 = arith.constant 0 : i32
    return %c0_i32, %c0_i32_0 : i32, i32
  }
  func.func @transform_3(%arg0: i32) -> (i32, i32) {
    %c0_i32 = arith.constant 0 : i32
    %c0_i32_0 = arith.constant 0 : i32
    %c0_i32_1 = arith.constant 0 : i32
    return %c0_i32, %c0_i32_0 : i32, i32
  }
  func.func @transform_4(%arg0: i32) -> (i32, i32) {
    %c0_i32 = arith.constant 0 : i32
    %c0_i32_0 = arith.constant 0 : i32
    %c0_i32_1 = arith.constant 0 : i32
    return %c0_i32, %c0_i32_0 : i32, i32
  }
  func.func @transform_5(%arg0: i32) -> (i32, i32) {
    %c0_i32 = arith.constant 0 : i32
    %c0_i32_0 = arith.constant 0 : i32
    %c0_i32_1 = arith.constant 0 : i32
    return %c0_i32, %c0_i32_0 : i32, i32
  }
  func.func @transform_6(%arg0: i32) -> (i32, i32) {
    %c0_i32 = arith.constant 0 : i32
    %c0_i32_0 = arith.constant 0 : i32
    %c0_i32_1 = arith.constant 0 : i32
    return %c0_i32, %c0_i32_0 : i32, i32
  }
  func.func @transform_7(%arg0: i32) -> (i32, i32) {
    %c0_i32 = arith.constant 0 : i32
    %c0_i32_0 = arith.constant 0 : i32
    return %arg0, %c0_i32 : i32, i32
  }
}

</mosaic_0001>

<bundles_post_ra>
// kernel: tpu_custom_call.1
= control target key start
LH: loop header
LB: loop body
LE: loop exit
PB: predicated region body
PF: predicated region fallthrough
CT: control target
= control target key end

     0   :  { %s654_s26 = smov 0   ;;  %s725_s0 = inlined_call_operand.vmem [shape: f32[16,32], index: 0, kind: input, shape index: {}]   ;;  %s726_s1 = inlined_call_operand.vmem [shape: f32[32,64], index: 1, kind: input, shape index: {}]   ;;  %s727_s2 = inlined_call_operand.vmem [shape: f32[1,64], index: 2, kind: input, shape index: {}]   ;;  %s728_s3 = inlined_call_operand.vmem [shape: f32[64,32], index: 3, kind: input, shape index: {}]   ;;  %s729_s4 = inlined_call_operand.vmem [shape: f32[1,32], index: 4, kind: input, shape index: {}]   ;;  %s730_s5 = inlined_call_operand.vmem [shape: f32[1,32], index: 5, kind: input, shape index: {}]   ;;  %s731_s6 = inlined_call_operand.<no memory space> [shape: f32[1,1], index: 6, kind: input, shape index: {}]   ;;  %s732_s7 = inlined_call_operand.vmem [shape: f32[16,1], index: 7, kind: output, shape index: {}]  }
   0x1   :  { %12 = sst [smem:[#allocation2]] %s731_s6 }
   0x2 LB: > { %s529_s27 = sadd.s32 4294967295, %s607_s26   ;;  %p533_p0 = scmp.ge.s32.totalorder %s607_s26, 1  ;;  %s607_s26 = sphi %s654_s26, %s18_s26  }
   0x3   : > { %p237_p1 = scmp.lt.s32.totalorder %s607_s26, 3 }
   0x5   : > { %p238_p2 = pnand %p533_p0, %p237_p1 }
   0x6   : > { %p267_p3 = scmp.lt.s32.totalorder (!%p238_p2), %s529_s27, 1  ;;  %s471_s17 = sld [smem:[#allocation2]] (!%p238_p2) }
   0x7   : > { %241 = sbr.rel (%p238_p2) target bundleno = 595 (0x253), region = 48 }
   0xc   : > { %v279_v0 = vld [vmem:[%s726_s1 + $0x18] sm:$0xff]  ;;  %v609_v1 = vmov 0.0   ;;  %v278_v2 = vld [vmem:[%s726_s1 + $0x10] sm:$0xff]  ;;  %vm610_vm0 = vmmov 0   ;;  %s734_s27 = smov (!%p267_p3, %s529_s27), 1  ;;  %v277_v3 = vld [vmem:[%s726_s1 + $0x8] sm:$0xff]  ;;  %v472_v35 = vstv %s471_s17 }
   0xd   : > { %557 = vmatprep.subr.mxu0 %v609_v1  ;;  %565 = vmatprep.mubr.msk.f32.mxu0 %vm610_vm0, %v609_v1  ;;  %s534_s10 = sshll.u32 %s734_s27, 3  ;;  %v276_v4 = vld [vmem:[%s726_s1] sm:$0xff]  ;;  %vm287_vm1 = vcmask 261120   ;;  %v373_v6 = vld [vmem:[%s728_s3 + $0x38] sm:$0xff]  ;;  %v372_v7 = vld [vmem:[%s728_s3 + $0x30] sm:$0xff]  ;;  %vm381_vm2 = vcmask 523264  }
   0xe   : > { %558 = vmatpush3.msra.mxu0 %v279_v0  ;;  %568 = vmatprep.subr.mxu1 %v609_v1  ;;  %s270_s15 = scalar_lea.vmem %s725_s0, %s534_s10  ;;  %v371_v8 = vld [vmem:[%s728_s3 + $0x28] sm:$0xff]  ;;  %v370_v9 = vld [vmem:[%s728_s3 + $0x20] sm:$0xff]  ;;  %v369_v10 = vld [vmem:[%s728_s3 + $0x18] sm:$0xff]  ;;  %s274_s20 = scalar_lea.vmem %s732_s7, %s534_s10  ;;  %vm474_vm3 = vcmask 7168  }
   0xf   : > { %559 = vmatprep.subr.mxu0 %v609_v1  ;;  %584 = vmatprep.mubr.msk.f32.mxu1 %vm610_vm0, %v609_v1  ;;  %v275_v5 = vld [vmem:[%s270_s15] sm:$0xff]  ;;  %v368_v11 = vld [vmem:[%s728_s3 + $0x10] sm:$0xff]  ;;  %v367_v12 = vld [vmem:[%s728_s3 + $0x8] sm:$0xff] }
  0x10   : > { %560 = vmatpush3.msra.mxu0 %v278_v2  ;;  %569 = vmatpush3.msra.mxu1 %v373_v6  ;;  %v366_v13 = vld [vmem:[%s728_s3] sm:$0xff] }
  0x11   : > { %561 = vmatprep.subr.mxu0 %v609_v1  ;;  %570 = vmatprep.subr.mxu1 %v609_v1  ;;  %v536_v14 = vld [vmem:[%s727_s2] ss:$0 sm:$0xff] }
  0x12   : > { %562 = vmatpush3.msra.mxu0 %v277_v3  ;;  %571 = vmatpush3.msra.mxu1 %v372_v7  ;;  %v538_v23 = vld [vmem:[%s729_s4] ss:$0 sm:$0xff] }
  0x13   : > { %563 = vmatprep.subr.mxu0 %v609_v1  ;;  %572 = vmatprep.subr.mxu1 %v609_v1  ;;  %v540_v31 = vld [vmem:[%s730_s5] ss:$0 sm:$0xff] }
  0x14   : > { %564 = vmatpush3.msra.mxu0 %v276_v4  ;;  %573 = vmatpush3.msra.mxu1 %v371_v8 }
  0x15   : > { %566 = vmatmul.mubr.msk.f32.vlgmr.msra.gmra.mxu0 %vm287_vm1, %v275_v5  ;;  %574 = vmatprep.subr.mxu1 %v609_v1 }
  0x16   : > { %575 = vmatpush3.msra.mxu1 %v370_v9 }
  0x17   : > { %576 = vmatprep.subr.mxu1 %v609_v1 }
  0x18   : > { %577 = vmatpush3.msra.mxu1 %v369_v10 }
  0x19   : > { %578 = vmatprep.subr.mxu1 %v609_v1 }
  0x1a   : > { %579 = vmatpush3.msra.mxu1 %v368_v11 }
  0x1b   : > { %580 = vmatprep.subr.mxu1 %v609_v1 }
  0x1c   : > { %581 = vmatpush3.msra.mxu1 %v367_v12 }
  0x1d   : > { %582 = vmatprep.subr.mxu1 %v609_v1 }
  0x1e   : > { %583 = vmatpush3.msra.mxu1 %v366_v13 }
  0xd5   : > { %v357_v15 = vpop.f32.mrf.mxu0 }
  0xd6   : > { %v358_v16 = vadd.f32 %v536_v14, %v357_v15 }
  0xd7   : > { %v567_v17 = vpop.f32.mrf.mxu0 }
  0xd8   : > { %v362_v18 = vmul.f32 0.70710677, %v358_v16  ;;  %v361_v20 = vmul.f32 0.5, %v358_v16 }
  0xda   : > { %597 = verf.f32 %v362_v18 }
  0xe7   : > { %v598_v19 = vpop.eup %597 }
  0xe8   : > { %v364_v21 = vadd.f32 1.0, %v598_v19 }
  0xea   : > { %v365_v22 = vmul.f32 %v364_v21, %v361_v20 }
  0xec   : > { %585 = vmatmul.mubr.msk.f32.vlgmr.msra.gmra.mxu1 %vm381_vm2, %v365_v22 }
 0x1ac   : > { %v451_v24 = vpop.f32.mrf.mxu1 }
 0x1ad   : > { %v452_v25 = vadd.f32 %v538_v23, %v451_v24 }
 0x1ae   : > { %v586_v26 = vpop.f32.mrf.mxu1 }
 0x1af   : > { %v456_v27 = vmul.f32 0.70710677, %v452_v25  ;;  %v455_v29 = vmul.f32 0.5, %v452_v25 }
 0x1b1   : > { %599 = verf.f32 %v456_v27 }
 0x1be   : > { %v600_v28 = vpop.eup %599 }
 0x1bf   : > { %v458_v30 = vadd.f32 1.0, %v600_v28 }
 0x1c1   : > { %v459_v32 = vmul.f32 %v458_v30, %v455_v29 }
 0x1c3   : > { %v467_v33 = vmul.f32 %v540_v31, %v459_v32 }
 0x1c5   : > { %v468_v34 = vsel %vm287_vm1, %v467_v33, 0.0 }
 0x1c6   : > { %469 = vadd.xlane.f32.xlu0 %v468_v34 }
 0x24f   : > { %v470_v36 = vpop.xlane.xlu0 %469 }
 0x250   : > { %v473_v37 = vadd.f32 %v472_v35, %v470_v36 }
 0x252   : > { %475 = vst.msk [vmem:[%s274_s20] sm:$0xff] %vm474_vm3, %v473_v37 }
 0x253 PF: > { %s18_s26 = sadd.s32 1, %s607_s26  }
 0x254   : > { %p15_p4 = scmp.ge.s32.totalorder %s18_s26, 4  }
 0x256   :  { %17 = sbr.rel (!%p15_p4) target bundleno = 2 (0x2), region = 78 }

</bundles_post_ra>
